<compile_context>
chip_gen: v5e
topology: v5e:2x2
jax: 0.10.0
libtpu: 0.0.40
codegen_flags: <defaults>
</compile_context>

<pallas_src>
import jax
import jax.numpy as jnp
from jax.experimental import pallas as pl
from jax.experimental.pallas import tpu as pltpu


def _round_up(v, m):
    return ((v + m - 1) // m) * m


def conv3x3_bias_relu_nchw(x_nchw, w_oihw, b):
    """Fused 3x3 'same' conv + bias + ReLU.

    x_nchw: (N, Cin, H, W) float32        (PyTorch NCHW)
    w_oihw: (Cout, Cin, 3, 3) float32     (PyTorch Conv2d weight layout)
    b:      (Cout,) float32
    returns (N, Cout, H, W) float32
    """
    N, Cin, H, W = x_nchw.shape
    Cout = w_oihw.shape[0]
    HW = H * W

    # Halo of >= W+1 zero lanes on each side of the flattened row-major
    # spatial axis, rounded to 128 so the interior store and the halo zeroing
    # are lane-aligned full-tile (unmasked) stores.
    halo = _round_up(W + 1, 128)
    P = halo + HW + halo

    # Wrapper work is metadata-only for x / y; the weight re-layout is a tiny
    # (9*Cout*Cin) tensor and the bias a column vector.
    x_flat = x_nchw.reshape(N, Cin, HW)                       # free reshape
    w9 = jnp.transpose(w_oihw, (2, 3, 0, 1)).reshape(9, Cout, Cin)
    w9 = w9.astype(jnp.bfloat16)                              # (tap, Cout, Cin)
    b_col = b.reshape(Cout, 1).astype(jnp.float32)

    def kernel(x_ref, w_ref, b_ref, o_ref, xh_ref):
        # x_ref : (Cin, HW)       f32   un-padded input block (one image)
        # w_ref : (9, Cout, Cin)  bf16  per-tap weights
        # b_ref : (Cout, 1)       f32   bias column
        # o_ref : (Cout, HW)      f32   lane-dense output block
        # xh_ref: (Cin, P)        bf16  flat spatially-padded scratch
        # Fused zero-pad + bf16 cast (all lane-aligned stores).
        xh_ref[:, 0:halo] = jnp.zeros((Cin, halo), jnp.bfloat16)
        xh_ref[:, halo + HW:P] = jnp.zeros((Cin, halo), jnp.bfloat16)
        xh_ref[:, halo:halo + HW] = x_ref[...].astype(jnp.bfloat16)

        # 0/1 masks removing the row wrap-around of the flat layout:
        # output column 0 must not see column W-1 of the row above (dx == 0
        # taps) and column W-1 must not see column 0 of the row below
        # (dx == 2 taps).  Hoisted out of the tap loop.
        col = jax.lax.broadcasted_iota(jnp.int32, (1, HW), 1) % W
        not_left = (col != 0).astype(jnp.bfloat16)
        not_right = (col != W - 1).astype(jnp.bfloat16)

        acc = jnp.zeros((Cout, HW), jnp.float32)
        for k in range(9):                          # static unroll, 3x3 taps
            dy, dx = k // 3, k % 3
            s = halo + (dy - 1) * W + (dx - 1)      # static lane offset
            xk = xh_ref[:, s:s + HW]                # (Cin, HW) shifted view
            if dx == 0:
                xk = xk * not_left
            elif dx == 2:
                xk = xk * not_right
            acc += jax.lax.dot_general(             # MXU, f32 accumulation
                w_ref[k], xk, (((1,), (0,)), ((), ())),
                preferred_element_type=jnp.float32)

        o_ref[...] = jnp.maximum(acc + b_ref[...], 0.0).astype(o_ref.dtype)

    out = pl.pallas_call(
        kernel,
        out_shape=jax.ShapeDtypeStruct((N, Cout, HW), jnp.float32),
        grid=(N,),
        in_specs=[
            pl.BlockSpec((None, Cin, HW), lambda n: (n, 0, 0)),
            pl.BlockSpec((9, Cout, Cin), lambda n: (0, 0, 0)),
            pl.BlockSpec((Cout, 1), lambda n: (0, 0)),
        ],
        out_specs=pl.BlockSpec((None, Cout, HW), lambda n: (n, 0, 0)),
        scratch_shapes=[pltpu.VMEM((Cin, P), jnp.bfloat16)],
        compiler_params=pltpu.CompilerParams(
            dimension_semantics=("parallel",)),
    )(x_flat, w9, b_col)

    return out.reshape(N, Cout, H, W)               # free reshape back to NCHW


class BottleneckPallas:
    """Pallas port of mist Bottleneck: forward(x) = block(x), NCHW in/out."""

    def __init__(self, in_channels, out_channels, key):
        kw, kb = jax.random.split(key)
        w = jax.random.normal(kw, (out_channels, in_channels, 3, 3), jnp.float32)
        self.w = w * (1.0 / (9.0 * in_channels)) ** 0.5   # fan-in init
        self.b = 0.01 * jax.random.normal(kb, (out_channels,), jnp.float32)

    def __call__(self, x_nchw):
        return conv3x3_bias_relu_nchw(x_nchw, self.w, self.b)


def _reference(x_nchw, w_oihw, b):
    """Pure-JAX reference (same bf16 operand rounding, f32 accumulate)."""
    xb = x_nchw.astype(jnp.bfloat16).astype(jnp.float32)
    wb = w_oihw.astype(jnp.bfloat16).astype(jnp.float32)
    y = jax.lax.conv_general_dilated(
        xb, wb, window_strides=(1, 1), padding="SAME",
        dimension_numbers=("NCHW", "OIHW", "NCHW"),
        precision=jax.lax.Precision.HIGHEST)
    return jnp.maximum(y + b[None, :, None, None], 0.0)


if __name__ == "__main__":
    key = jax.random.PRNGKey(0)
    k_param, k_x = jax.random.split(key)

    # Small bottleneck-level shapes: batch=2, in/out channels=32, spatial 16x16.
    N, C_IN, C_OUT, H, W = 2, 32, 32, 16, 16
    block = BottleneckPallas(C_IN, C_OUT, key=k_param)
    x = jax.random.normal(k_x, (N, C_IN, H, W), jnp.float32)   # NCHW like PyTorch

    fwd = jax.jit(block.__call__)
    y = jax.block_until_ready(fwd(x))

    assert y.shape == (N, C_OUT, H, W)
    assert bool(jnp.all(jnp.isfinite(y)))

    y_ref = _reference(x, block.w, block.b)
    max_err = float(jnp.max(jnp.abs(y - y_ref)))
    assert jnp.allclose(y, y_ref, atol=2e-3, rtol=2e-3), f"max_abs_err={max_err}"

    print("KERNEL_OK")
</pallas_src>

<mosaic_0001>
module attributes {stable_mosaic.version = 11 : i64} {
  func.func @kernel(%arg0: i32, %arg1: memref<1x32x256xf32, #tpu.memory_space<vmem>>, %arg2: memref<9x32x32xbf16, #tpu.memory_space<vmem>>, %arg3: memref<32x1xf32, #tpu.memory_space<vmem>>, %arg4: memref<1x32x256xf32, #tpu.memory_space<vmem>>, %arg5: memref<32x512xbf16, #tpu.memory_space<vmem>>) attributes {dimension_semantics = [#tpu.dimension_semantics<parallel>], iteration_bounds = array<i64: 2>, scalar_prefetch = 0 : i64, scratch_operands = 1 : i64, tpu.core_type = #tpu.core_type<tc>, window_params = [{transform_indices = @transform_0, window_bounds = array<i64: 1, 32, 256>}, {pipeline_mode = #tpu.pipeline_mode<synchronous>, transform_indices = @transform_1, window_bounds = array<i64: 9, 32, 32>}, {pipeline_mode = #tpu.pipeline_mode<synchronous>, transform_indices = @transform_2, window_bounds = array<i64: 32, 1>}, {transform_indices = @transform_3, window_bounds = array<i64: 1, 32, 256>}]} {
    %cst = arith.constant 0.000000e+00 : bf16
    %0 = vector.broadcast %cst : bf16 to vector<32x128xbf16>
    %c0 = arith.constant 0 : index
    %c0_0 = arith.constant 0 : index
    %1 = vector.load %arg5[%c0, %c0_0] : memref<32x512xbf16, #tpu.memory_space<vmem>>, vector<32x128xbf16>
    tpu.vector_store %arg5[%c0, %c0_0], %0 {strides = array<i32>} : memref<32x512xbf16, #tpu.memory_space<vmem>>, vector<32x128xbf16>,
    %cst_1 = arith.constant 0.000000e+00 : bf16
    %2 = vector.broadcast %cst_1 : bf16 to vector<32x128xbf16>
    %c0_2 = arith.constant 0 : index
    %c384 = arith.constant 384 : index
    %3 = vector.load %arg5[%c0_2, %c384] : memref<32x512xbf16, #tpu.memory_space<vmem>>, vector<32x128xbf16>
    tpu.vector_store %arg5[%c0_2, %c384], %2 {strides = array<i32>} : memref<32x512xbf16, #tpu.memory_space<vmem>>, vector<32x128xbf16>,
    %c0_3 = arith.constant 0 : index
    %c0_4 = arith.constant 0 : index
    %c0_5 = arith.constant 0 : index
    %4 = vector.load %arg1[%c0_3, %c0_4, %c0_5] : memref<1x32x256xf32, #tpu.memory_space<vmem>>, vector<1x32x256xf32>
    %5 = vector.shape_cast %4 : vector<1x32x256xf32> to vector<32x256xf32>
    %6 = arith.truncf %5 : vector<32x256xf32> to vector<32x256xbf16>
    %c0_6 = arith.constant 0 : index
    %c128 = arith.constant 128 : index
    %7 = vector.load %arg5[%c0_6, %c128] : memref<32x512xbf16, #tpu.memory_space<vmem>>, vector<32x256xbf16>
    tpu.vector_store %arg5[%c0_6, %c128], %6 {strides = array<i32>} : memref<32x512xbf16, #tpu.memory_space<vmem>>, vector<32x256xbf16>,
    %8 = tpu.iota {dimensions = array<i32: 1>} : vector<1x256xi32>
    %c16_i32 = arith.constant 16 : i32
    %c0_i32 = arith.constant 0 : i32
    %9 = arith.cmpi eq, %c16_i32, %c0_i32 : i32
    %c1_i32 = arith.constant 1 : i32
    %10 = arith.select %9, %c1_i32, %c16_i32 : i32
    %11 = vector.broadcast %10 : i32 to vector<1x256xi32>
    %12 = arith.remsi %8, %11 : vector<1x256xi32>
    %c0_i32_7 = arith.constant 0 : i32
    %13 = vector.broadcast %c0_i32_7 : i32 to vector<1x256xi32>
    %14 = arith.cmpi ne, %12, %13 : vector<1x256xi32>
    %c0_i32_8 = arith.constant 0 : i32
    %15 = vector.broadcast %c0_i32_8 : i32 to vector<1x256xi32>
    %16 = arith.cmpi slt, %12, %15 : vector<1x256xi32>
    %c0_i32_9 = arith.constant 0 : i32
    %17 = arith.cmpi slt, %10, %c0_i32_9 : i32
    %18 = vector.broadcast %17 : i1 to vector<1x256xi1>
    %19 = vector.broadcast %18 : vector<1x256xi1> to vector<1x256xi1>
    %20 = arith.xori %16, %19 : vector<1x256xi1>
    %21 = arith.andi %20, %14 : vector<1x256xi1>
    %22 = vector.broadcast %10 : i32 to vector<1x256xi32>
    %23 = arith.addi %12, %22 : vector<1x256xi32>
    %24 = arith.select %21, %23, %12 : vector<1x256xi1>, vector<1x256xi32>
    %c0_i32_10 = arith.constant 0 : i32
    %25 = vector.broadcast %c0_i32_10 : i32 to vector<1x256xi32>
    %26 = arith.cmpi ne, %24, %25 : vector<1x256xi32>
    %27 = arith.extui %26 : vector<1x256xi1> to vector<1x256xi32>
    %28 = arith.sitofp %27 : vector<1x256xi32> to vector<1x256xf32>
    %29 = arith.truncf %28 : vector<1x256xf32> to vector<1x256xbf16>
    %c15_i32 = arith.constant 15 : i32
    %30 = vector.broadcast %c15_i32 : i32 to vector<1x256xi32>
    %31 = arith.cmpi ne, %24, %30 : vector<1x256xi32>
    %32 = arith.extui %31 : vector<1x256xi1> to vector<1x256xi32>
    %33 = arith.sitofp %32 : vector<1x256xi32> to vector<1x256xf32>
    %34 = arith.truncf %33 : vector<1x256xf32> to vector<1x256xbf16>
    %cst_11 = arith.constant 0.000000e+00 : f32
    %35 = vector.broadcast %cst_11 : f32 to vector<32x256xf32>
    %c0_12 = arith.constant 0 : index
    %c111 = arith.constant 111 : index
    %36 = vector.load %arg5[%c0_12, %c111] : memref<32x512xbf16, #tpu.memory_space<vmem>>, vector<32x256xbf16>
    %37 = vector.broadcast %29 : vector<1x256xbf16> to vector<32x256xbf16>
    %38 = arith.mulf %36, %37 : vector<32x256xbf16>
    %c0_13 = arith.constant 0 : index
    %c0_14 = arith.constant 0 : index
    %c0_15 = arith.constant 0 : index
    %39 = vector.load %arg2[%c0_13, %c0_14, %c0_15] : memref<9x32x32xbf16, #tpu.memory_space<vmem>>, vector<1x32x32xbf16>
    %40 = vector.shape_cast %39 : vector<1x32x32xbf16> to vector<32x32xbf16>
    %cst_16 = arith.constant dense<0.000000e+00> : vector<32x256xf32>
    %41 = tpu.matmul %40, %38, %cst_16 {dimension_numbers = #tpu.dot_dimension_numbers<[1], [0], [0], [1], [0, 0, 1, 1], [], []>} : vector<32x32xbf16>, vector<32x256xbf16>, vector<32x256xf32> -> vector<32x256xf32>
    %42 = arith.addf %35, %41 : vector<32x256xf32>
    %c0_17 = arith.constant 0 : index
    %c112 = arith.constant 112 : index
    %43 = vector.load %arg5[%c0_17, %c112] : memref<32x512xbf16, #tpu.memory_space<vmem>>, vector<32x256xbf16>
    %c1 = arith.constant 1 : index
    %c0_18 = arith.constant 0 : index
    %c0_19 = arith.constant 0 : index
    %44 = vector.load %arg2[%c1, %c0_18, %c0_19] : memref<9x32x32xbf16, #tpu.memory_space<vmem>>, vector<1x32x32xbf16>
    %45 = vector.shape_cast %44 : vector<1x32x32xbf16> to vector<32x32xbf16>
    %cst_20 = arith.constant dense<0.000000e+00> : vector<32x256xf32>
    %46 = tpu.matmul %45, %43, %cst_20 {dimension_numbers = #tpu.dot_dimension_numbers<[1], [0], [0], [1], [0, 0, 1, 1], [], []>} : vector<32x32xbf16>, vector<32x256xbf16>, vector<32x256xf32> -> vector<32x256xf32>
    %47 = arith.addf %42, %46 : vector<32x256xf32>
    %c0_21 = arith.constant 0 : index
    %c113 = arith.constant 113 : index
    %48 = vector.load %arg5[%c0_21, %c113] : memref<32x512xbf16, #tpu.memory_space<vmem>>, vector<32x256xbf16>
    %49 = vector.broadcast %34 : vector<1x256xbf16> to vector<32x256xbf16>
    %50 = arith.mulf %48, %49 : vector<32x256xbf16>
    %c2 = arith.constant 2 : index
    %c0_22 = arith.constant 0 : index
    %c0_23 = arith.constant 0 : index
    %51 = vector.load %arg2[%c2, %c0_22, %c0_23] : memref<9x32x32xbf16, #tpu.memory_space<vmem>>, vector<1x32x32xbf16>
    %52 = vector.shape_cast %51 : vector<1x32x32xbf16> to vector<32x32xbf16>
    %cst_24 = arith.constant dense<0.000000e+00> : vector<32x256xf32>
    %53 = tpu.matmul %52, %50, %cst_24 {dimension_numbers = #tpu.dot_dimension_numbers<[1], [0], [0], [1], [0, 0, 1, 1], [], []>} : vector<32x32xbf16>, vector<32x256xbf16>, vector<32x256xf32> -> vector<32x256xf32>
    %54 = arith.addf %47, %53 : vector<32x256xf32>
    %c0_25 = arith.constant 0 : index
    %c127 = arith.constant 127 : index
    %55 = vector.load %arg5[%c0_25, %c127] : memref<32x512xbf16, #tpu.memory_space<vmem>>, vector<32x256xbf16>
    %56 = vector.broadcast %29 : vector<1x256xbf16> to vector<32x256xbf16>
    %57 = arith.mulf %55, %56 : vector<32x256xbf16>
    %c3 = arith.constant 3 : index
    %c0_26 = arith.constant 0 : index
    %c0_27 = arith.constant 0 : index
    %58 = vector.load %arg2[%c3, %c0_26, %c0_27] : memref<9x32x32xbf16, #tpu.memory_space<vmem>>, vector<1x32x32xbf16>
    %59 = vector.shape_cast %58 : vector<1x32x32xbf16> to vector<32x32xbf16>
    %cst_28 = arith.constant dense<0.000000e+00> : vector<32x256xf32>
    %60 = tpu.matmul %59, %57, %cst_28 {dimension_numbers = #tpu.dot_dimension_numbers<[1], [0], [0], [1], [0, 0, 1, 1], [], []>} : vector<32x32xbf16>, vector<32x256xbf16>, vector<32x256xf32> -> vector<32x256xf32>
    %61 = arith.addf %54, %60 : vector<32x256xf32>
    %c0_29 = arith.constant 0 : index
    %c128_30 = arith.constant 128 : index
    %62 = vector.load %arg5[%c0_29, %c128_30] : memref<32x512xbf16, #tpu.memory_space<vmem>>, vector<32x256xbf16>
    %c4 = arith.constant 4 : index
    %c0_31 = arith.constant 0 : index
    %c0_32 = arith.constant 0 : index
    %63 = vector.load %arg2[%c4, %c0_31, %c0_32] : memref<9x32x32xbf16, #tpu.memory_space<vmem>>, vector<1x32x32xbf16>
    %64 = vector.shape_cast %63 : vector<1x32x32xbf16> to vector<32x32xbf16>
    %cst_33 = arith.constant dense<0.000000e+00> : vector<32x256xf32>
    %65 = tpu.matmul %64, %62, %cst_33 {dimension_numbers = #tpu.dot_dimension_numbers<[1], [0], [0], [1], [0, 0, 1, 1], [], []>} : vector<32x32xbf16>, vector<32x256xbf16>, vector<32x256xf32> -> vector<32x256xf32>
    %66 = arith.addf %61, %65 : vector<32x256xf32>
    %c0_34 = arith.constant 0 : index
    %c129 = arith.constant 129 : index
    %67 = vector.load %arg5[%c0_34, %c129] : memref<32x512xbf16, #tpu.memory_space<vmem>>, vector<32x256xbf16>
    %68 = vector.broadcast %34 : vector<1x256xbf16> to vector<32x256xbf16>
    %69 = arith.mulf %67, %68 : vector<32x256xbf16>
    %c5 = arith.constant 5 : index
    %c0_35 = arith.constant 0 : index
    %c0_36 = arith.constant 0 : index
    %70 = vector.load %arg2[%c5, %c0_35, %c0_36] : memref<9x32x32xbf16, #tpu.memory_space<vmem>>, vector<1x32x32xbf16>
    %71 = vector.shape_cast %70 : vector<1x32x32xbf16> to vector<32x32xbf16>
    %cst_37 = arith.constant dense<0.000000e+00> : vector<32x256xf32>
    %72 = tpu.matmul %71, %69, %cst_37 {dimension_numbers = #tpu.dot_dimension_numbers<[1], [0], [0], [1], [0, 0, 1, 1], [], []>} : vector<32x32xbf16>, vector<32x256xbf16>, vector<32x256xf32> -> vector<32x256xf32>
    %73 = arith.addf %66, %72 : vector<32x256xf32>
    %c0_38 = arith.constant 0 : index
    %c143 = arith.constant 143 : index
    %74 = vector.load %arg5[%c0_38, %c143] : memref<32x512xbf16, #tpu.memory_space<vmem>>, vector<32x256xbf16>
    %75 = vector.broadcast %29 : vector<1x256xbf16> to vector<32x256xbf16>
    %76 = arith.mulf %74, %75 : vector<32x256xbf16>
    %c6 = arith.constant 6 : index
    %c0_39 = arith.constant 0 : index
    %c0_40 = arith.constant 0 : index
    %77 = vector.load %arg2[%c6, %c0_39, %c0_40] : memref<9x32x32xbf16, #tpu.memory_space<vmem>>, vector<1x32x32xbf16>
    %78 = vector.shape_cast %77 : vector<1x32x32xbf16> to vector<32x32xbf16>
    %cst_41 = arith.constant dense<0.000000e+00> : vector<32x256xf32>
    %79 = tpu.matmul %78, %76, %cst_41 {dimension_numbers = #tpu.dot_dimension_numbers<[1], [0], [0], [1], [0, 0, 1, 1], [], []>} : vector<32x32xbf16>, vector<32x256xbf16>, vector<32x256xf32> -> vector<32x256xf32>
    %80 = arith.addf %73, %79 : vector<32x256xf32>
    %c0_42 = arith.constant 0 : index
    %c144 = arith.constant 144 : index
    %81 = vector.load %arg5[%c0_42, %c144] : memref<32x512xbf16, #tpu.memory_space<vmem>>, vector<32x256xbf16>
    %c7 = arith.constant 7 : index
    %c0_43 = arith.constant 0 : index
    %c0_44 = arith.constant 0 : index
    %82 = vector.load %arg2[%c7, %c0_43, %c0_44] : memref<9x32x32xbf16, #tpu.memory_space<vmem>>, vector<1x32x32xbf16>
    %83 = vector.shape_cast %82 : vector<1x32x32xbf16> to vector<32x32xbf16>
    %cst_45 = arith.constant dense<0.000000e+00> : vector<32x256xf32>
    %84 = tpu.matmul %83, %81, %cst_45 {dimension_numbers = #tpu.dot_dimension_numbers<[1], [0], [0], [1], [0, 0, 1, 1], [], []>} : vector<32x32xbf16>, vector<32x256xbf16>, vector<32x256xf32> -> vector<32x256xf32>
    %85 = arith.addf %80, %84 : vector<32x256xf32>
    %c0_46 = arith.constant 0 : index
    %c145 = arith.constant 145 : index
    %86 = vector.load %arg5[%c0_46, %c145] : memref<32x512xbf16, #tpu.memory_space<vmem>>, vector<32x256xbf16>
    %87 = vector.broadcast %34 : vector<1x256xbf16> to vector<32x256xbf16>
    %88 = arith.mulf %86, %87 : vector<32x256xbf16>
    %c8 = arith.constant 8 : index
    %c0_47 = arith.constant 0 : index
    %c0_48 = arith.constant 0 : index
    %89 = vector.load %arg2[%c8, %c0_47, %c0_48] : memref<9x32x32xbf16, #tpu.memory_space<vmem>>, vector<1x32x32xbf16>
    %90 = vector.shape_cast %89 : vector<1x32x32xbf16> to vector<32x32xbf16>
    %cst_49 = arith.constant dense<0.000000e+00> : vector<32x256xf32>
    %91 = tpu.matmul %90, %88, %cst_49 {dimension_numbers = #tpu.dot_dimension_numbers<[1], [0], [0], [1], [0, 0, 1, 1], [], []>} : vector<32x32xbf16>, vector<32x256xbf16>, vector<32x256xf32> -> vector<32x256xf32>
    %92 = arith.addf %85, %91 : vector<32x256xf32>
    %c0_50 = arith.constant 0 : index
    %c0_51 = arith.constant 0 : index
    %93 = vector.load %arg3[%c0_50, %c0_51] : memref<32x1xf32, #tpu.memory_space<vmem>>, vector<32x1xf32>
    %94 = vector.broadcast %93 : vector<32x1xf32> to vector<32x256xf32>
    %95 = arith.addf %92, %94 : vector<32x256xf32>
    %cst_52 = arith.constant 0.000000e+00 : f32
    %96 = vector.broadcast %cst_52 : f32 to vector<32x256xf32>
    %97 = arith.maximumf %95, %96 : vector<32x256xf32>
    %c0_53 = arith.constant 0 : index
    %c0_54 = arith.constant 0 : index
    %c0_55 = arith.constant 0 : index
    %98 = vector.load %arg4[%c0_53, %c0_54, %c0_55] : memref<1x32x256xf32, #tpu.memory_space<vmem>>, vector<1x32x256xf32>
    %99 = vector.shape_cast %98 : vector<1x32x256xf32> to vector<32x256xf32>
    %100 = vector.shape_cast %97 : vector<32x256xf32> to vector<1x32x256xf32>
    tpu.vector_store %arg4[%c0_53, %c0_54, %c0_55], %100 {strides = array<i32>} : memref<1x32x256xf32, #tpu.memory_space<vmem>>, vector<1x32x256xf32>,
    return
  }
  func.func @transform_0(%arg0: i32) -> (i32, i32, i32) {
    %c0_i32 = arith.constant 0 : i32
    %c0_i32_0 = arith.constant 0 : i32
    %c0_i32_1 = arith.constant 0 : i32
    return %arg0, %c0_i32, %c0_i32_0 : i32, i32, i32
  }
  func.func @transform_1(%arg0: i32) -> (i32, i32, i32) {
    %c0_i32 = arith.constant 0 : i32
    %c0_i32_0 = arith.constant 0 : i32
    %c0_i32_1 = arith.constant 0 : i32
    %c0_i32_2 = arith.constant 0 : i32
    return %c0_i32, %c0_i32_0, %c0_i32_1 : i32, i32, i32
  }
  func.func @transform_2(%arg0: i32) -> (i32, i32) {
    %c0_i32 = arith.constant 0 : i32
    %c0_i32_0 = arith.constant 0 : i32
    %c0_i32_1 = arith.constant 0 : i32
    return %c0_i32, %c0_i32_0 : i32, i32
  }
  func.func @transform_3(%arg0: i32) -> (i32, i32, i32) {
    %c0_i32 = arith.constant 0 : i32
    %c0_i32_0 = arith.constant 0 : i32
    %c0_i32_1 = arith.constant 0 : i32
    return %arg0, %c0_i32, %c0_i32_0 : i32, i32, i32
  }
}

</mosaic_0001>

<bundles_post_ra>
// kernel: a_call__.1
= control target key start
LH: loop header
LB: loop body
LE: loop exit
PB: predicated region body
PF: predicated region fallthrough
CT: control target
= control target key end

     0   :  { %s1765_s12 = smov 0   ;;  %s2206_s0 = inlined_call_operand.vmem [shape: f32[2,32,256], index: 0, kind: input, shape index: {}]   ;;  %s2207_s1 = inlined_call_operand.vmem [shape: bf16[9,32,32], index: 1, kind: input, shape index: {}]   ;;  %s2208_s2 = inlined_call_operand.vmem [shape: f32[32,1], index: 2, kind: input, shape index: {}]   ;;  %s2209_s3 = inlined_call_operand.vmem [shape: f32[2,32,256], index: 3, kind: output, shape index: {}]  }
   0x1 LB: > { %s1417_s13 = sadd.s32 4294967295, %s1733_s12   ;;  %p1421_p0 = scmp.ge.s32.totalorder %s1733_s12, 1  ;;  %s1733_s12 = sphi %s1765_s12, %s13_s12  }
   0x2   : > { %p137_p1 = scmp.lt.s32.totalorder %s1733_s12, 3 }
   0x4   : > { %p138_p2 = pnand %p1421_p0, %p137_p1 }
   0x5   : > { %p161_p3 = scmp.lt.s32.totalorder (!%p138_p2), %s1417_s13, 1  ;;  %s1737_s18 = smov (!%p138_p2), 111  }
   0x6   : > { %141 = sbr.rel (%p138_p2) target bundleno = 633 (0x279), region = 32  ;;  %s1738_s19 = smov (!%p138_p2), 16  }
   0x7   : > { %s1739_s20 = smov (!%p138_p2), 113   ;;  %s1740_s21 = smov (!%p138_p2), 127  }
   0x8   : > { %s1741_s22 = smov (!%p138_p2), 17   ;;  %s1742_s23 = smov (!%p138_p2), 15  }
   0x9   : > { %s1743_s24 = smov (!%p138_p2), 1  }
   0xb   : > { %v196_v0 = vlaneseq  ;;  %v1735_v1 = vmov 0   ;;  %s2215_s13 = smov (!%p161_p3, %s1417_s13), 1  ;;  %v1736_v6 = vmov 0.0   ;;  %vm265_vm4 = vcmask 908288  }
   0xc   : > { %174 = vst [vmem:[#allocation2 + $0x20] sm:$0xf] %v1735_v1  ;;  %1724 = vset.pattern.permute.xlu0 %v1735_v1  ;;  %1725 = vset.pattern.permute.xlu1 %v1735_v1  ;;  %s1636_s14 = sshll.u32 %s2215_s13, 6  ;;  %vm488_vm5 = vcmask 924672   ;;  %vm345_vm6 = vcmask 130048   ;;  %vm609_vm7 = vcmask 1039360  }
   0xd   : > { %v197_v2 = vand.u32 127, %v196_v0  ;;  %175 = vst [vmem:[#allocation2 + $0x30] sm:$0xf] %v1735_v1  ;;  %1726 = vset.pattern.permute.xlu2 %v1735_v1  ;;  %s165_s17 = scalar_lea.vmem %s2206_s0, %s1636_s14  ;;  %vm354_vm8 = vcmask 261120   ;;  %vm427_vm9 = vcmask 138240   ;;  %vm544_vm10 = vcmask 121856  }
   0xe   : > { %172 = vst [vmem:[#allocation2] sm:$0xf] %v1735_v1  ;;  %v184_v8 = vld [vmem:[%s165_s17 + $0x20] sm:$0xff]  ;;  %v185_v9 = vld [vmem:[%s165_s17 + $0x28] sm:$0xff]  ;;  %v186_v15 = vld [vmem:[%s165_s17 + $0x30] sm:$0xff]  ;;  %vm665_vm11 = vcmask 7168  }
   0xf   : > { %v198_v3 = vadd.s32 128, %v197_v2  ;;  %v203_v4 = vand.u32 15, %v197_v2  ;;  %173 = vst [vmem:[#allocation2 + $0x10] sm:$0xf] %v1735_v1  ;;  %v1781_v11 = vpack.c.bf16 %v185_v9, %v184_v8  ;;  %v187_v16 = vld [vmem:[%s165_s17 + $0x38] sm:$0xff]  ;;  %v180_v22 = vld [vmem:[%s165_s17] sm:$0xff] }
  0x10   : > { %176 = vst [vmem:[#allocation2 + $0xc] sm:$0xf] %v1735_v1  ;;  %v1793_v21 = vpack.c.bf16 %v187_v16, %v186_v15  ;;  %v181_v23 = vld [vmem:[%s165_s17 + $0x8] sm:$0xff]  ;;  %v182_v25 = vld [vmem:[%s165_s17 + $0x10] sm:$0xff]  ;;  %v183_v26 = vld [vmem:[%s165_s17 + $0x18] sm:$0xff]  ;;  %vm1132_vm12 = vcmask 916480  }
  0x11   : > { %v210_v5 = vand.u32 15, %v198_v3  ;;  %vm223_vm0 = vcmp.ne.s32.totalorder %v203_v4, 0  ;;  %177 = vst [vmem:[#allocation2 + $0x1c] sm:$0xf] %v1735_v1  ;;  %vm1783_vm2 = vcmp.ne.s32.totalorder %v203_v4, 15  ;;  %v1796_v27 = vpack.c.bf16 %v181_v23, %v180_v22 }
  0x12   : > { %v1426_v7 = vsel %vm223_vm0, 1.0, %v1736_v6  ;;  %178 = vst [vmem:[#allocation2 + $0x2c] sm:$0xf] %v1735_v1  ;;  %v1801_v29 = vpack.c.bf16 %v183_v26, %v182_v25  ;;  %v1428_v30 = vsel %vm1783_vm2, 1.0, %v1736_v6 }
  0x13   : > { %vm224_vm1 = vcmp.ne.s32.totalorder %v210_v5, 0  ;;  %v1456_v10 = vld [vmem:[#allocation2 + $0x20] sm:$0xf]  ;;  %179 = vst [vmem:[#allocation2 + $0x3c] sm:$0xf] %v1735_v1  ;;  %vm1789_vm3 = vcmp.ne.s32.totalorder %v210_v5, 15 }
  0x14   : > { %v1427_v12 = vsel %vm224_vm1, 1.0, %v1736_v6  ;;  %v1642_v14 = vld [vmem:[#allocation2 + $0x2c] sm:$0xf0]  ;;  %194 = vst [vmem:[#allocation2 + $0x24] sm:$0xff] %v1781_v11  ;;  %v1429_v31 = vsel %vm1789_vm3, 1.0, %v1736_v6 }
  0x15   : > { %v1787_v17 = vpack.i.bf16 %v1427_v12, %v1426_v7  ;;  %v1457_v19 = vor.u32 %v1642_v14, %v1456_v10  ;;  %v1444_v20 = vld [vmem:[#allocation2] sm:$0xf]  ;;  %195 = vst [vmem:[#allocation2 + $0x34] sm:$0xff] %v1793_v21  ;;  %v1809_v32 = vpack.i.bf16 %v1429_v31, %v1428_v30 }
  0x16   : > { %v1639_v24 = vld [vmem:[#allocation2 + $0xc] sm:$0xf0]  ;;  %192 = vst [vmem:[#allocation2 + $0x4] sm:$0xff] %v1796_v27 }
  0x17   : > { %1695 = vrot.lane.b32.xlu0 %v1787_v17, %s1737_s18  ;;  %339 = vrot.lane.b32.xlu1 %v1457_v19, %s1738_s19  ;;  %v1445_v28 = vor.u32 %v1639_v24, %v1444_v20  ;;  %193 = vst [vmem:[#allocation2 + $0x14] sm:$0xff] %v1801_v29 }
  0x19   : > { %333 = vrot.lane.b32.xlu2 %v1445_v28, %s1738_s19 }
  0x1b   : > { %v1641_v33 = vld [vmem:[#allocation2 + $0x24] sm:$0xf]  ;;  %v1464_v38 = vld [vmem:[#allocation2 + $0x28] sm:$0xf] }
  0x1c   : > { %v1458_v34 = vld [vmem:[#allocation2 + $0x30] sm:$0xf0]  ;;  %v1643_v39 = vld [vmem:[#allocation2 + $0x34] sm:$0xf0]  ;;  %v1815_v45 = vld [vmem:[#allocation2 + $0x28] sm:$0xff]  }
  0x1d   : > { %v1461_v35 = vor.u32 %v1641_v33, %v1458_v34  ;;  %v1638_v36 = vld [vmem:[#allocation2 + $0x4] sm:$0xf]  ;;  %v1452_v40 = vld [vmem:[#allocation2 + $0x8] sm:$0xf]  ;;  %v1465_v43 = vor.u32 %v1643_v39, %v1464_v38  ;;  %v1817_v46 = vld [vmem:[#allocation2 + $0x38] sm:$0xff]   ;;  %v1820_v49 = vunpack.c.l.bf16 %v1815_v45 }
  0x1e   : > { %v1446_v37 = vld [vmem:[#allocation2 + $0x10] sm:$0xf0]  ;;  %v1640_v41 = vld [vmem:[#allocation2 + $0x14] sm:$0xf0]  ;;  %v241_v47 = vld [vmem:[#allocation2 + $0x20] sm:$0xff]  ;;  %v1823_v50 = vunpack.c.l.bf16 %v1817_v46 }
  0x1f   : > { %1700 = vrot.lane.b32.xlu0 %v1809_v32, %s1739_s20  ;;  %341 = vrot.lane.b32.xlu1 %v1461_v35, %s1738_s19  ;;  %v1449_v42 = vor.u32 %v1638_v36, %v1446_v37  ;;  %v1453_v44 = vor.u32 %v1640_v41, %v1452_v40  ;;  %v243_v48 = vld [vmem:[#allocation2 + $0x30] sm:$0xff]  ;;  %v1825_v51 = vunpack.c.l.bf16 %v241_v47  ;;  %v1829_v53 = vld [vmem:[#allocation2 + $0x8] sm:$0xff]   ;;  %v1831_v55 = vunpack.c.h.bf16 %v241_v47  ;;  %v1835_v59 = vld [vmem:[#allocation2 + $0x18] sm:$0xff]  }
  0x20   : > { %v1827_v52 = vunpack.c.l.bf16 %v243_v48  ;;  %v1833_v58 = vunpack.c.h.bf16 %v243_v48  ;;  %v237_v60 = vld [vmem:[#allocation2] sm:$0xff]  ;;  %v239_v61 = vld [vmem:[#allocation2 + $0x10] sm:$0xff]  ;;  %v1838_v62 = vunpack.c.l.bf16 %v1829_v53  ;;  %v1846_v4 = vunpack.c.l.bf16 %v1835_v59 }
  0x21   : > { %1705 = vrot.lane.b32.xlu2 %v1787_v17, %s1740_s21  ;;  %v1848_v5 = vunpack.c.l.bf16 %v237_v60  ;;  %v1850_v6 = vunpack.c.l.bf16 %v239_v61  ;;  %v1854_v12 = vunpack.c.h.bf16 %v237_v60  ;;  %v1856_v13 = vunpack.c.h.bf16 %v239_v61 }
  0x27   : > { %335 = vrot.lane.b32.xlu0 %v1449_v42, %s1738_s19  ;;  %337 = vrot.lane.b32.xlu1 %v1453_v44, %s1738_s19 }
  0x29   : > { %343 = vrot.lane.b32.xlu2 %v1465_v43, %s1738_s19 }
  0x73   : > { %v334_v38 = vpop.permute.xlu2 %333 }
  0x7b   : > { %v1706_v61 = vpop.permute.xlu2 %1705 }
  0x89   : > { %v1696_v54 = vpop.permute.xlu0 %1695  ;;  %v340_v37 = vpop.permute.xlu1 %339 }
  0x8a   : > { %v1698_v56 = vunpack.i.h.bf16 %v1696_v54  ;;  %v1697_v57 = vunpack.i.l.bf16 %v1696_v54 }
  0x8c   : > { %v278_v63 = vmul.f32 %v1698_v56, %v1820_v49  ;;  %v281_v0 = vmul.f32 %v1698_v56, %v1823_v50  ;;  %v276_v1 = vmul.f32 %v1697_v57, %v1825_v51  ;;  %v279_v2 = vmul.f32 %v1697_v57, %v1827_v52 }
  0x8d   : > { %v266_v3 = vsel %vm265_vm4, %v1697_v57, %v1698_v56  ;;  %v272_v16 = vmul.f32 %v1698_v56, %v1838_v62  ;;  %v275_v18 = vmul.f32 %v1698_v56, %v1846_v4  ;;  %v270_v19 = vmul.f32 %v1697_v57, %v1848_v5 }
  0x8e   : > { %v287_v7 = vpack.c.bf16 %v281_v0, %v278_v63  ;;  %v285_v8 = vpack.c.bf16 %v279_v2, %v276_v1  ;;  %v277_v9 = vmul.f32 %v266_v3, %v1831_v55  ;;  %v280_v10 = vmul.f32 %v266_v3, %v1833_v58 }
  0x8f   : > { %v273_v20 = vmul.f32 %v1697_v57, %v1850_v6  ;;  %v271_v24 = vmul.f32 %v266_v3, %v1854_v12  ;;  %v274_v25 = vmul.f32 %v266_v3, %v1856_v13  ;;  %v284_v26 = vpack.c.bf16 %v275_v18, %v272_v16 }
  0x90   : > { %425 = vrot.lane.b32.xlu2 %v287_v7, %s1741_s22  ;;  %421 = vrot.lane.b32.xlu0 %v285_v8, %s1741_s22  ;;  %v286_v14 = vpack.c.bf16 %v280_v10, %v277_v9  ;;  %v1707_v7 = vunpack.i.l.bf16 %v1706_v61  ;;  %v1708_v9 = vunpack.i.h.bf16 %v1706_v61  ;;  %v1645_v61 = vld [vmem:[%s2207_s1 + $0x8] sm:$0xff] }
  0x91   : > { %v1701_v15 = vpop.permute.xlu0 %1700  ;;  %v282_v28 = vpack.c.bf16 %v273_v20, %v270_v19  ;;  %v283_v30 = vpack.c.bf16 %v274_v25, %v271_v24  ;;  %v342_v44 = vpop.permute.xlu1 %341 }
  0x92   : > { %423 = vrot.lane.b32.xlu1 %v286_v14, %s1741_s22  ;;  %v1703_v22 = vunpack.i.h.bf16 %v1701_v15  ;;  %v1702_v23 = vunpack.i.l.bf16 %v1701_v15  ;;  %v348_v54 = vsel %vm345_vm6, %v340_v37, %v342_v44  ;;  %v620_v10 = vmul.f32 %v1707_v7, %v1825_v51 }
  0x93   : > { %367 = vmatpush.bf16.msra.mxu0 %v348_v54  ;;  %1672 = vmatpush.bf16.msra.mxu2 %v348_v54  ;;  %v623_v14 = vmul.f32 %v1707_v7, %v1827_v52  ;;  %v610_v15 = vsel %vm609_vm7, %v1707_v7, %v1708_v9  ;;  %v614_v20 = vmul.f32 %v1707_v7, %v1848_v5 }
  0x94   : > { %v501_v31 = vmul.f32 %v1703_v22, %v1820_v49  ;;  %v489_v33 = vsel %vm488_vm5, %v1702_v23, %v1703_v22  ;;  %v504_v34 = vmul.f32 %v1703_v22, %v1823_v50  ;;  %v499_v35 = vmul.f32 %v1702_v23, %v1825_v51 }
  0x95   : > { %v502_v36 = vmul.f32 %v1702_v23, %v1827_v52  ;;  %v500_v39 = vmul.f32 %v489_v33, %v1831_v55  ;;  %v503_v40 = vmul.f32 %v489_v33, %v1833_v58  ;;  %v495_v48 = vmul.f32 %v1703_v22, %v1838_v62 }
  0x96   : > { %v510_v41 = vpack.c.bf16 %v504_v34, %v501_v31  ;;  %v498_v56 = vmul.f32 %v1703_v22, %v1846_v4  ;;  %v493_v57 = vmul.f32 %v1702_v23, %v1848_v5  ;;  %v496_v60 = vmul.f32 %v1702_v23, %v1850_v6 }
  0x97   : > { %v508_v42 = vpack.c.bf16 %v502_v36, %v499_v35  ;;  %v509_v43 = vpack.c.bf16 %v503_v40, %v500_v39  ;;  %v494_v0 = vmul.f32 %v489_v33, %v1854_v12  ;;  %v497_v1 = vmul.f32 %v489_v33, %v1856_v13  ;;  %v1646_v33 = vld [vmem:[%s2207_s1 + $0x10] sm:$0xff]  ;;  %v1644_v39 = vld [vmem:[%s2207_s1] sm:$0xff] }
  0x98   : > { %419 = vrot.lane.b32.xlu2 %v284_v26, %s1741_s22  ;;  %415 = vrot.lane.b32.xlu0 %v282_v28, %s1741_s22  ;;  %v507_v2 = vpack.c.bf16 %v498_v56, %v495_v48  ;;  %v505_v3 = vpack.c.bf16 %v496_v60, %v493_v57  ;;  %v629_v16 = vpack.c.bf16 %v623_v14, %v620_v10  ;;  %v1648_v60 = vld [vmem:[%s2207_s1 + $0x20] sm:$0xff] }
  0x99   : > { %v336_v47 = vpop.permute.xlu0 %335  ;;  %v506_v8 = vpack.c.bf16 %v497_v1, %v494_v0  ;;  %v621_v18 = vmul.f32 %v610_v15, %v1831_v55  ;;  %v624_v19 = vmul.f32 %v610_v15, %v1833_v58  ;;  %v617_v51 = vmul.f32 %v1707_v7, %v1850_v6 }
  0x9a   : > { %417 = vrot.lane.b32.xlu1 %v283_v30, %s1741_s22  ;;  %v346_v63 = vsel %vm345_vm6, %v334_v38, %v336_v47  ;;  %v622_v52 = vmul.f32 %v1708_v9, %v1820_v49  ;;  %v625_v22 = vmul.f32 %v1708_v9, %v1823_v50  ;;  %v615_v25 = vmul.f32 %v610_v15, %v1854_v12  ;;  %v344_v49 = vpop.permute.xlu2 %343  ;;  %v338_v12 = vpop.permute.xlu1 %337 }
  0x9b   : > { %368 = vmatpush.bf16.msra.mxu0 %v346_v63  ;;  %1673 = vmatpush.bf16.msra.mxu2 %v346_v63  ;;  %v630_v23 = vpack.c.bf16 %v624_v19, %v621_v18  ;;  %v626_v24 = vpack.c.bf16 %v617_v51, %v614_v20  ;;  %v618_v58 = vmul.f32 %v610_v15, %v1856_v13  ;;  %v1941_v63 = vunpack.c.h.bf16 %v1815_v45 }
  0x9c   : > { %v631_v55 = vpack.c.bf16 %v625_v22, %v622_v52  ;;  %v616_v5 = vmul.f32 %v1708_v9, %v1838_v62  ;;  %v619_v6 = vmul.f32 %v1708_v9, %v1846_v4  ;;  %v349_v50 = vsel %vm345_vm6, %v342_v44, %v344_v49  ;;  %v1647_v4 = vld [vmem:[%s2207_s1 + $0x18] sm:$0xff] }
  0x9d   : > { %v627_v26 = vpack.c.bf16 %v618_v58, %v615_v25  ;;  %386 = vmatpush.bf16.msra.mxu1 %v349_v50  ;;  %1674 = vmatpush.bf16.msra.mxu3 %v349_v50  ;;  %v347_v13 = vsel %vm345_vm6, %v336_v47, %v338_v12  ;;  %v1944_v0 = vunpack.c.h.bf16 %v1817_v46  ;;  %v1947_v1 = vunpack.c.l.bf16 %v1781_v11 }
  0x9e   : > { %1467 = vmatmul.msk.bf16.vlgmr.msra.gmra.mxu2 %vm354_vm8, %v1647_v4  ;;  %1466 = vmatmul.msk.bf16.vlgmr.msra.gmra.mxu0 %vm354_vm8, %v1646_v33  ;;  %v1957_v46 = vunpack.c.h.bf16 %v1781_v11  ;;  %v1963_v9 = vunpack.c.h.bf16 %v1829_v53  ;;  %v1971_v11 = vunpack.c.h.bf16 %v1835_v59  ;;  %v1977_v53 = vunpack.c.l.bf16 %v1801_v29 }
  0x9f   : > { %v1984_v59 = vunpack.c.h.bf16 %v1796_v27 }
  0xa0   : > { %542 = vrot.lane.b32.xlu2 %v510_v41, %s1742_s23  ;;  %538 = vrot.lane.b32.xlu0 %v508_v42, %s1742_s23 }
  0xa1   : > { %387 = vmatpush.bf16.msra.mxu1 %v347_v13  ;;  %1675 = vmatpush.bf16.msra.mxu3 %v347_v13  ;;  %v1649_v13 = vld [vmem:[%s2207_s1 + $0x28] sm:$0xff] }
  0xa2   : > { %540 = vrot.lane.b32.xlu1 %v509_v43, %s1742_s23 }
  0xa4   : > { %1469 = vmatmul.msk.bf16.vlgmr.msra.gmra.mxu3 %vm354_vm8, %v1647_v4  ;;  %1468 = vmatmul.msk.bf16.vlgmr.msra.gmra.mxu1 %vm354_vm8, %v1646_v33  ;;  %v1655_v4 = vld [vmem:[#allocation2 + $0x30] sm:$0xf0]  ;;  %v1654_v33 = vld [vmem:[#allocation2 + $0x28] sm:$0xf] }
  0xa8   : > { %536 = vrot.lane.b32.xlu2 %v507_v2, %s1742_s23  ;;  %532 = vrot.lane.b32.xlu0 %v505_v3, %s1742_s23  ;;  %v1950_v2 = vunpack.c.l.bf16 %v1793_v21 }
  0xaa   : > { %534 = vrot.lane.b32.xlu1 %v506_v8, %s1742_s23  ;;  %v1960_v8 = vunpack.c.h.bf16 %v1793_v21  ;;  %v1974_v21 = vunpack.c.l.bf16 %v1796_v27 }
  0xb0   : > { %1710 = vrot.lane.b32.xlu0 %v1809_v32, %s1743_s24  ;;  %659 = vrot.lane.b32.xlu2 %v629_v16, %s1743_s24 }
  0xb2   : > { %1715 = vrot.lane.b32.xlu1 %v1787_v17, %s1742_s23  ;;  %v628_v17 = vpack.c.bf16 %v619_v6, %v616_v5 }
  0xb8   : > { %661 = vrot.lane.b32.xlu0 %v630_v23, %s1743_s24  ;;  %653 = vrot.lane.b32.xlu2 %v626_v24, %s1743_s24 }
  0xba   : > { %663 = vrot.lane.b32.xlu1 %v631_v55, %s1743_s24  ;;  %v1987_v55 = vunpack.c.h.bf16 %v1801_v29 }
  0xc0   : > { %655 = vrot.lane.b32.xlu0 %v627_v26, %s1743_s24  ;;  %1720 = vrot.lane.b32.xlu2 %v1809_v32, %s1741_s22 }
  0xc2   : > { %657 = vrot.lane.b32.xlu1 %v628_v17, %s1743_s24  ;;  %s2183_s24 = scalar_lea.vmem %s2209_s3, %s1636_s14 }
  0xea   : > { %v426_v62 = vpop.permute.xlu2 %425 }
  0xf2   : > { %v420_v34 = vpop.permute.xlu2 %419 }
  0xfa   : > { %v543_v40 = vpop.permute.xlu2 %542 }
 0x102   : > { %v422_v28 = vpop.permute.xlu0 %421  ;;  %v537_v48 = vpop.permute.xlu2 %536 }
 0x104   : > { %v424_v30 = vpop.permute.xlu1 %423 }
 0x105   : > { %v430_v32 = vsel %vm427_vm9, %v422_v28, %v424_v30  ;;  %v431_v31 = vsel %vm427_vm9, %v424_v30, %v426_v62  ;;  %v1536_v62 = vld [vmem:[#allocation2 + $0x24] sm:$0xf] }
 0x106   : > { %448 = vmatpush.bf16.msrb.mxu2 %v430_v32  ;;  %467 = vmatpush.bf16.msrb.mxu3 %v431_v31 }
 0x10a   : > { %v416_v35 = vpop.permute.xlu0 %415  ;;  %v660_v20 = vpop.permute.xlu2 %659 }
 0x10c   : > { %v418_v36 = vpop.permute.xlu1 %417 }
 0x10d   : > { %v428_v37 = vsel %vm427_vm9, %v416_v35, %v418_v36  ;;  %v429_v38 = vsel %vm427_vm9, %v418_v36, %v420_v34  ;;  %v1538_v34 = vld [vmem:[#allocation2 + $0x34] sm:$0xf0] }
 0x10e   : > { %449 = vmatpush.bf16.msrb.mxu2 %v428_v37  ;;  %468 = vmatpush.bf16.msrb.mxu3 %v429_v38 }
 0x111   : > { %1480 = vmatmul.msk.bf16.vlgmr.msrb.gmra.mxu3 %vm354_vm8, %v1644_v39  ;;  %1478 = vmatmul.msk.bf16.vlgmr.msrb.gmra.mxu2 %vm354_vm8, %v1644_v39  ;;  %v1537_v39 = vor.u32 %v1655_v4, %v1536_v62  ;;  %v1600_v62 = vld [vmem:[#allocation2 + $0xc] sm:$0xf] }
 0x112   : > { %v539_v41 = vpop.permute.xlu0 %538  ;;  %v654_v37 = vpop.permute.xlu2 %653 }
 0x114   : > { %v541_v42 = vpop.permute.xlu1 %540 }
 0x115   : > { %v547_v43 = vsel %vm544_vm10, %v539_v41, %v541_v42  ;;  %v548_v44 = vsel %vm544_vm10, %v541_v42, %v543_v40  ;;  %v1541_v42 = vor.u32 %v1654_v33, %v1538_v34  ;;  %v1658_v34 = vld [vmem:[#allocation2 + $0x8] sm:$0xf] }
 0x116   : > { %565 = vmatpush.bf16.msrb.mxu0 %v547_v43  ;;  %584 = vmatpush.bf16.msrb.mxu1 %v548_v44  ;;  %v1528_v44 = vld [vmem:[#allocation2 + $0x4] sm:$0xf] }
 0x11a   : > { %v533_v47 = vpop.permute.xlu0 %532  ;;  %v1721_v4 = vpop.permute.xlu2 %1720 }
 0x11b   : > { %v1722_v33 = vunpack.i.l.bf16 %v1721_v4 }
 0x11c   : > { %v535_v54 = vpop.permute.xlu1 %534 }
 0x11d   : > { %v545_v56 = vsel %vm544_vm10, %v533_v47, %v535_v54  ;;  %v546_v57 = vsel %vm544_vm10, %v535_v54, %v537_v48  ;;  %v1653_v47 = vld [vmem:[#allocation2 + $0x10] sm:$0xf0] }
 0x11e   : > { %566 = vmatpush.bf16.msrb.mxu0 %v545_v56  ;;  %585 = vmatpush.bf16.msrb.mxu1 %v546_v57  ;;  %v1650_v57 = vld [vmem:[%s2207_s1 + $0x30] sm:$0xff] }
 0x121   : > { %1494 = vmatmul.msk.bf16.vlgmr.msrb.gmra.mxu0 %vm354_vm8, %v1648_v60  ;;  %1496 = vmatmul.msk.bf16.vlgmr.msrb.gmra.mxu1 %vm354_vm8, %v1648_v60 }
 0x122   : > { %v1711_v3 = vpop.permute.xlu0 %1710  ;;  %1481 = vmatmul.msk.bf16.gmra.mxu3 %vm354_vm8, %v1645_v61  ;;  %1479 = vmatmul.msk.bf16.gmra.mxu2 %vm354_vm8, %v1645_v61  ;;  %v1529_v61 = vor.u32 %v1653_v47, %v1528_v44  ;;  %v1211_v44 = vmul.f32 %v1722_v33, %v1950_v2 }
 0x123   : > { %v1713_v45 = vunpack.i.h.bf16 %v1711_v3  ;;  %v1712_v7 = vunpack.i.l.bf16 %v1711_v3  ;;  %777 = vmatpush.bf16.msra.mxu0 %v1537_v39  ;;  %v1652_v3 = vld [vmem:[#allocation2 + $0x8] sm:$0xf]  ;;  %796 = vmatpush.bf16.msra.mxu1 %v1541_v42 }
 0x124   : > { %v1716_v10 = vpop.permute.xlu1 %1715 }
 0x125   : > { %v854_v14 = vmul.f32 %v1713_v45, %v1941_v63  ;;  %v857_v15 = vmul.f32 %v1713_v45, %v1944_v0  ;;  %v852_v16 = vmul.f32 %v1712_v7, %v1947_v1  ;;  %v855_v18 = vmul.f32 %v1712_v7, %v1950_v2 }
 0x126   : > { %v842_v19 = vsel %vm665_vm11, %v1712_v7, %v1713_v45  ;;  %v848_v25 = vmul.f32 %v1713_v45, %v1963_v9  ;;  %v851_v58 = vmul.f32 %v1713_v45, %v1971_v11  ;;  %v846_v6 = vmul.f32 %v1712_v7, %v1974_v21  ;;  %v1530_v45 = vld [vmem:[#allocation2 + $0x14] sm:$0xf0] }
 0x127   : > { %v863_v51 = vpack.c.bf16 %v857_v15, %v854_v14  ;;  %v861_v52 = vpack.c.bf16 %v855_v18, %v852_v16  ;;  %v853_v22 = vmul.f32 %v842_v19, %v1957_v46  ;;  %v856_v23 = vmul.f32 %v842_v19, %v1960_v8  ;;  %778 = vmatpush.bf16.msra.mxu0 %v1529_v61 }
 0x128   : > { %v849_v26 = vmul.f32 %v1712_v7, %v1977_v53  ;;  %v1718_v17 = vunpack.i.h.bf16 %v1716_v10  ;;  %v1717_v50 = vunpack.i.l.bf16 %v1716_v10  ;;  %v847_v29 = vmul.f32 %v842_v19, %v1984_v59 }
 0x129   : > { %895 = vrot.lane.b32.xlu2 %v863_v51, %s1740_s21  ;;  %891 = vrot.lane.b32.xlu0 %v861_v52, %s1740_s21  ;;  %v862_v24 = vpack.c.bf16 %v856_v23, %v853_v22  ;;  %v850_v12 = vmul.f32 %v842_v19, %v1987_v55  ;;  %v860_v28 = vpack.c.bf16 %v851_v58, %v848_v25  ;;  %v1656_v23 = vld [vmem:[%s2207_s1 + $0x40] sm:$0xff] }
 0x12a   : > { %v662_v5 = vpop.permute.xlu0 %661  ;;  %v858_v30 = vpack.c.bf16 %v849_v26, %v846_v6  ;;  %v975_v32 = vmul.f32 %v1718_v17, %v1941_v63  ;;  %v978_v31 = vmul.f32 %v1718_v17, %v1944_v0  ;;  %v973_v35 = vmul.f32 %v1717_v50, %v1947_v1  ;;  %v1663_v6 = vld [vmem:[#allocation2 + $0x38] sm:$0xf0]  ;;  %v1604_v26 = vld [vmem:[#allocation2 + $0x24] sm:$0xf] }
 0x12b   : > { %893 = vrot.lane.b32.xlu1 %v862_v24, %s1740_s21  ;;  %v668_v49 = vsel %vm665_vm11, %v660_v20, %v662_v5  ;;  %v963_v36 = vsel %vm544_vm10, %v1717_v50, %v1718_v17  ;;  %v859_v40 = vpack.c.bf16 %v850_v12, %v847_v29  ;;  %v976_v41 = vmul.f32 %v1717_v50, %v1950_v2 }
 0x12c   : > { %686 = vmatpush.bf16.msra.mxu2 %v668_v49  ;;  %v664_v27 = vpop.permute.xlu1 %663  ;;  %v974_v48 = vmul.f32 %v963_v36, %v1957_v46  ;;  %v977_v54 = vmul.f32 %v963_v36, %v1960_v8  ;;  %v984_v7 = vpack.c.bf16 %v978_v31, %v975_v32  ;;  %v1533_v16 = vor.u32 %v1652_v3, %v1530_v45  ;;  %v1651_v49 = vld [vmem:[%s2207_s1 + $0x38] sm:$0xff]  ;;  %v1659_v32 = vld [vmem:[#allocation2 + $0x10] sm:$0xf0]  ;;  %v394_v45 = vpop.f32.mrf.mxu3 }
 0x12d   : > { %v669_v38 = vsel %vm665_vm11, %v662_v5, %v664_v27  ;;  %v982_v10 = vpack.c.bf16 %v976_v41, %v973_v35  ;;  %v969_v18 = vmul.f32 %v1718_v17, %v1963_v9  ;;  %v972_v19 = vmul.f32 %v1718_v17, %v1971_v11  ;;  %v1612_v5 = vld [vmem:[#allocation2 + $0x2c] sm:$0xf]  ;;  %v1662_v17 = vld [vmem:[#allocation2 + $0x30] sm:$0xf0]  ;;  %v1606_v27 = vld [vmem:[#allocation2 + $0x34] sm:$0xf0] }
 0x12e   : > { %705 = vmatpush.bf16.msra.mxu3 %v669_v38  ;;  %v983_v15 = vpack.c.bf16 %v977_v54, %v974_v48  ;;  %v967_v20 = vmul.f32 %v1717_v50, %v1974_v21  ;;  %v970_v51 = vmul.f32 %v1717_v50, %v1977_v53  ;;  %797 = vmatpush.bf16.msra.mxu1 %v1533_v16  ;;  %v1661_v50 = vld [vmem:[#allocation2 + $0x28] sm:$0xf]  ;;  %v1723_v31 = vunpack.i.h.bf16 %v1721_v4  ;;  %v1594_v35 = vld [vmem:[#allocation2 + $0x14] sm:$0xf0] }
 0x12f   : > { %v968_v52 = vmul.f32 %v963_v36, %v1984_v59  ;;  %v971_v22 = vmul.f32 %v963_v36, %v1987_v55  ;;  %v981_v24 = vpack.c.bf16 %v972_v19, %v969_v18  ;;  %v1613_v29 = vor.u32 %v1663_v6, %v1612_v5  ;;  %v1657_v38 = vld [vmem:[%s2207_s1 + $0x48] sm:$0xff] }
 0x130   : > { %v979_v25 = vpack.c.bf16 %v970_v51, %v967_v20  ;;  %v1605_v12 = vor.u32 %v1662_v17, %v1604_v26  ;;  %v1597_v39 = vor.u32 %v1658_v34, %v1594_v35  ;;  %v1198_v41 = vsel %vm427_vm9, %v1722_v33, %v1723_v31  ;;  %v1664_v17 = vld [vmem:[%s2207_s1 + $0x50] sm:$0xff] }
 0x131   : > { %889 = vrot.lane.b32.xlu2 %v860_v28, %s1740_s21  ;;  %885 = vrot.lane.b32.xlu0 %v858_v30, %s1740_s21  ;;  %v980_v58 = vpack.c.bf16 %v971_v22, %v968_v52  ;;  %v1660_v28 = vld [vmem:[#allocation2 + $0x18] sm:$0xf0]  ;;  %v1592_v30 = vld [vmem:[#allocation2 + $0x4] sm:$0xf]  ;;  %v1213_v42 = vmul.f32 %v1723_v31, %v1944_v0  ;;  %v1209_v47 = vmul.f32 %v1198_v41, %v1957_v46 }
 0x132   : > { %v656_v43 = vpop.permute.xlu0 %655  ;;  %1497 = vmatmul.msk.bf16.gmra.mxu1 %vm354_vm8, %v1649_v13  ;;  %1495 = vmatmul.msk.bf16.gmra.mxu0 %vm354_vm8, %v1649_v13  ;;  %v1609_v13 = vor.u32 %v1661_v50, %v1606_v27  ;;  %v1601_v36 = vor.u32 %v1660_v28, %v1600_v62  ;;  %v1212_v48 = vmul.f32 %v1198_v41, %v1960_v8 }
 0x133   : > { %887 = vrot.lane.b32.xlu1 %v859_v40, %s1740_s21  ;;  %v666_v56 = vsel %vm665_vm11, %v654_v37, %v656_v43  ;;  %s1744_s21 = smov 112   ;;  %v1593_v37 = vor.u32 %v1659_v32, %v1592_v30  ;;  %v1210_v40 = vmul.f32 %v1723_v31, %v1941_v63  ;;  %v1204_v0 = vmul.f32 %v1723_v31, %v1963_v9  ;;  %v375_v9 = vpop.f32.mrf.mxu2 }
 0x134   : > { %687 = vmatpush.bf16.msra.mxu2 %v666_v56  ;;  %v658_v60 = vpop.permute.xlu1 %657  ;;  %v1218_v56 = vpack.c.bf16 %v1212_v48, %v1209_v47  ;;  %v1202_v2 = vmul.f32 %v1722_v33, %v1974_v21  ;;  %v1205_v46 = vmul.f32 %v1722_v33, %v1977_v53  ;;  %v1203_v8 = vmul.f32 %v1198_v41, %v1984_v59  ;;  %v2068_v53 = vpop.f32.mrf.mxu3  ;;  %v1665_v48 = vld [vmem:[%s2207_s1 + $0x58] sm:$0xff] }
 0x135   : > { %v667_v14 = vsel %vm665_vm11, %v656_v43, %v658_v60  ;;  %v1208_v43 = vmul.f32 %v1722_v33, %v1947_v1  ;;  %v1219_v63 = vpack.c.bf16 %v1213_v42, %v1210_v40  ;;  %v1207_v1 = vmul.f32 %v1723_v31, %v1971_v11  ;;  %v370_v11 = vpop.f32.mrf.mxu0 }
 0x136   : > { %706 = vmatpush.bf16.msra.mxu3 %v667_v14  ;;  %v1214_v61 = vpack.c.bf16 %v1205_v46, %v1202_v2 }
 0x137   : > { %1510 = vmatmul.msk.bf16.vlgmr.msra.gmra.mxu2 %vm354_vm8, %v1650_v57  ;;  %v1217_v54 = vpack.c.bf16 %v1211_v44, %v1208_v43  ;;  %v1216_v60 = vpack.c.bf16 %v1207_v1, %v1204_v0 }
 0x139   : > { %1016 = vrot.lane.b32.xlu2 %v984_v7, %s1739_s20  ;;  %1012 = vrot.lane.b32.xlu0 %v982_v10, %s1739_s20  ;;  %v389_v7 = vpop.f32.mrf.mxu1 }
 0x13a   : > { %1512 = vmatmul.msk.bf16.vlgmr.msra.gmra.mxu3 %vm354_vm8, %v1650_v57  ;;  %v1206_v57 = vmul.f32 %v1198_v41, %v1987_v55 }
 0x13b   : > { %1014 = vrot.lane.b32.xlu1 %v983_v15, %s1739_s20  ;;  %v2066_v10 = vpop.f32.mrf.mxu2 }
 0x13c   : > { %v1215_v3 = vpack.c.bf16 %v1206_v57, %v1203_v8 }
 0x13d   : > { %v372_v59 = vpop.f32.mrf.mxu0 }
 0x141   : > { %1010 = vrot.lane.b32.xlu2 %v981_v24, %s1739_s20  ;;  %1006 = vrot.lane.b32.xlu0 %v979_v25, %s1739_s20  ;;  %v391_v55 = vpop.f32.mrf.mxu1 }
 0x142   : > { %1544 = vmatmul.msk.bf16.vlgmr.msra.gmra.mxu1 %vm354_vm8, %v1656_v23  ;;  %1542 = vmatmul.msk.bf16.vlgmr.msra.gmra.mxu0 %vm354_vm8, %v1656_v23 }
 0x143   : > { %1008 = vrot.lane.b32.xlu1 %v980_v58, %s1739_s20 }
 0x147   : > { %1511 = vmatmul.msk.bf16.gmra.mxu2 %vm354_vm8, %v1651_v49 }
 0x149   : > { %1130 = vrot.lane.b32.xlu2 %v1613_v29, %s1744_s21  ;;  %1126 = vrot.lane.b32.xlu0 %v1605_v12, %s1744_s21 }
 0x14a   : > { %1513 = vmatmul.msk.bf16.gmra.mxu3 %vm354_vm8, %v1651_v49 }
 0x14b   : > { %1128 = vrot.lane.b32.xlu1 %v1609_v13, %s1744_s21 }
 0x151   : > { %1124 = vrot.lane.b32.xlu2 %v1601_v36, %s1744_s21  ;;  %1120 = vrot.lane.b32.xlu0 %v1593_v37, %s1744_s21 }
 0x152   : > { %1545 = vmatmul.msk.bf16.gmra.mxu1 %vm354_vm8, %v1657_v38  ;;  %1543 = vmatmul.msk.bf16.gmra.mxu0 %vm354_vm8, %v1657_v38 }
 0x153   : > { %1122 = vrot.lane.b32.xlu1 %v1597_v39, %s1744_s21 }
 0x159   : > { %1251 = vrot.lane.b32.xlu2 %v1219_v63, %s1737_s18  ;;  %1247 = vrot.lane.b32.xlu0 %v1217_v54, %s1737_s18  ;;  %v1666_v54 = vld [vmem:[%s2207_s1 + $0x60] sm:$0xff] }
 0x15b   : > { %1249 = vrot.lane.b32.xlu1 %v1218_v56, %s1737_s18 }
 0x161   : > { %1245 = vrot.lane.b32.xlu2 %v1216_v60, %s1737_s18  ;;  %1241 = vrot.lane.b32.xlu0 %v1214_v61, %s1737_s18  ;;  %v1314_v60 = vld [vmem:[%s2208_s2] sm:$0xff] }
 0x163   : > { %1243 = vrot.lane.b32.xlu1 %v1215_v3, %s1737_s18 }
 0x169   : > { %1320 = vperm.xlu0 %1724, %v1314_v60  }
 0x183   : > { %v896_v21 = vpop.permute.xlu2 %895 }
 0x18b   : > { %v890_v14 = vpop.permute.xlu2 %889 }
 0x193   : > { %v1017_v23 = vpop.permute.xlu2 %1016 }
 0x194   : > { %v451_v16 = vpop.f32.mrf.mxu2  ;;  %v470_v18 = vpop.f32.mrf.mxu3 }
 0x195   : > { %v452_v58 = vadd.f32 %v451_v16, %v370_v11  ;;  %v471_v5 = vadd.f32 %v470_v18, %v389_v7  ;;  %v1667_v16 = vld [vmem:[%s2207_s1 + $0x68] sm:$0xff] }
 0x19b   : > { %v892_v15 = vpop.permute.xlu0 %891  ;;  %v1011_v4 = vpop.permute.xlu2 %1010 }
 0x19c   : > { %v453_v49 = vpop.f32.mrf.mxu2  ;;  %v472_v50 = vpop.f32.mrf.mxu3 }
 0x19d   : > { %v894_v19 = vpop.permute.xlu1 %893  ;;  %v454_v31 = vadd.f32 %v453_v49, %v372_v59  ;;  %v473_v33 = vadd.f32 %v472_v50, %v391_v55  ;;  %v1670_v49 = vld [vmem:[%s2207_s1 + $0x80] sm:$0xff]  ;;  %v1671_v50 = vld [vmem:[%s2207_s1 + $0x88] sm:$0xff] }
 0x19e   : > { %v900_v20 = vsel %vm609_vm7, %v892_v15, %v894_v19  ;;  %v901_v51 = vsel %vm609_vm7, %v894_v19, %v896_v21  ;;  %v568_v52 = vpop.f32.mrf.mxu0  ;;  %v587_v22 = vpop.f32.mrf.mxu1  ;;  %v1668_v15 = vld [vmem:[%s2207_s1 + $0x70] sm:$0xff] }
 0x19f   : > { %918 = vmatpush.bf16.msrb.mxu2 %v900_v20  ;;  %937 = vmatpush.bf16.msrb.mxu3 %v901_v51  ;;  %v2077_v27 = vadd.f32 %v568_v52, %v452_v58  ;;  %v2079_v29 = vadd.f32 %v587_v22, %v471_v5  ;;  %v1315_v20 = vld [vmem:[%s2208_s2 + $0x8] sm:$0xff]  ;;  %v1316_v51 = vld [vmem:[%s2208_s2 + $0x10] sm:$0xff] }
 0x1a0   : > { %1325 = vperm.xlu1 %1725, %v1315_v20   ;;  %1330 = vperm.xlu2 %1726, %v1316_v51  }
 0x1a3   : > { %v886_v24 = vpop.permute.xlu0 %885  ;;  %v1131_v63 = vpop.permute.xlu2 %1130 }
 0x1a5   : > { %v888_v25 = vpop.permute.xlu1 %887  ;;  %v456_v36 = vpop.f32.mrf.mxu2 }
 0x1a6   : > { %v898_v6 = vsel %vm609_vm7, %v886_v24, %v888_v25  ;;  %v899_v26 = vsel %vm609_vm7, %v888_v25, %v890_v14  ;;  %v570_v12 = vpop.f32.mrf.mxu0  ;;  %v589_v13 = vpop.f32.mrf.mxu1  ;;  %v457_v42 = vadd.f32 %v456_v36, %v375_v9  ;;  %v1317_v24 = vld [vmem:[%s2208_s2 + $0x18] sm:$0xff] }
 0x1a7   : > { %919 = vmatpush.bf16.msrb.mxu2 %v898_v6  ;;  %938 = vmatpush.bf16.msrb.mxu3 %v899_v26  ;;  %v2085_v34 = vadd.f32 %v570_v12, %v454_v31  ;;  %v2087_v35 = vadd.f32 %v589_v13, %v473_v33  ;;  %v475_v37 = vpop.f32.mrf.mxu3 }
 0x1a8   : > { %v476_v43 = vadd.f32 %v475_v37, %v394_v45  ;;  %1335 = vperm.xlu1 %1725, %v1317_v24  }
 0x1aa   : > { %1558 = vmatmul.msk.bf16.vlgmr.msrb.gmra.mxu2 %vm354_vm8, %v1664_v17  ;;  %1560 = vmatmul.msk.bf16.vlgmr.msrb.gmra.mxu3 %vm354_vm8, %v1664_v17  ;;  %v1669_v17 = vld [vmem:[%s2207_s1 + $0x78] sm:$0xff] }
 0x1ab   : > { %v1013_v62 = vpop.permute.xlu0 %1012 }
 0x1ad   : > { %v1015_v28 = vpop.permute.xlu1 %1014  ;;  %v458_v1 = vpop.f32.mrf.mxu2 }
 0x1ae   : > { %v1021_v30 = vsel %vm488_vm5, %v1013_v62, %v1015_v28  ;;  %v1022_v32 = vsel %vm488_vm5, %v1015_v28, %v1017_v23  ;;  %v459_v8 = vadd.f32 %v458_v1, %v2066_v10  ;;  %v1125_v10 = vpop.permute.xlu2 %1124 }
 0x1af   : > { %1039 = vmatpush.bf16.msrb.mxu0 %v1021_v30  ;;  %1058 = vmatpush.bf16.msrb.mxu1 %v1022_v32  ;;  %v573_v38 = vpop.f32.mrf.mxu0  ;;  %v592_v39 = vpop.f32.mrf.mxu1 }
 0x1b0   : > { %v2097_v56 = vadd.f32 %v573_v38, %v457_v42  ;;  %v2099_v0 = vadd.f32 %v592_v39, %v476_v43  ;;  %v477_v2 = vpop.f32.mrf.mxu3 }
 0x1b1   : > { %v478_v57 = vadd.f32 %v477_v2, %v2068_v53 }
 0x1b3   : > { %v1007_v40 = vpop.permute.xlu0 %1006 }
 0x1b5   : > { %v1009_v41 = vpop.permute.xlu1 %1008 }
 0x1b6   : > { %v1019_v44 = vsel %vm488_vm5, %v1007_v40, %v1009_v41  ;;  %v1020_v47 = vsel %vm488_vm5, %v1009_v41, %v1011_v4  ;;  %v1252_v18 = vpop.permute.xlu2 %1251 }
 0x1b7   : > { %1040 = vmatpush.bf16.msrb.mxu0 %v1019_v44  ;;  %1059 = vmatpush.bf16.msrb.mxu1 %v1020_v47  ;;  %v575_v61 = vpop.f32.mrf.mxu0  ;;  %v594_v3 = vpop.f32.mrf.mxu1 }
 0x1b8   : > { %v2110_v45 = vadd.f32 %v575_v61, %v459_v8  ;;  %v2112_v11 = vadd.f32 %v594_v3, %v478_v57 }
 0x1ba   : > { %1559 = vmatmul.msk.bf16.gmra.mxu2 %vm354_vm8, %v1665_v48  ;;  %1561 = vmatmul.msk.bf16.gmra.mxu3 %vm354_vm8, %v1665_v48  ;;  %v689_v12 = vpop.f32.mrf.mxu2 }
 0x1bb   : > { %1574 = vmatmul.msk.bf16.vlgmr.msrb.gmra.mxu0 %vm354_vm8, %v1666_v54  ;;  %1576 = vmatmul.msk.bf16.vlgmr.msrb.gmra.mxu1 %vm354_vm8, %v1666_v54  ;;  %v1127_v46 = vpop.permute.xlu0 %1126 }
 0x1bd   : > { %v1129_v9 = vpop.permute.xlu1 %1128  ;;  %v708_v13 = vpop.f32.mrf.mxu3 }
 0x1be   : > { %v1135_v7 = vsel %vm1132_vm12, %v1127_v46, %v1129_v9  ;;  %v1136_v21 = vsel %vm1132_vm12, %v1129_v9, %v1131_v63  ;;  %v1246_v58 = vpop.permute.xlu2 %1245  ;;  %v718_v9 = vadd.f32 %v689_v12, %v2077_v27 }
 0x1bf   : > { %1153 = vmatpush.bf16.msra.mxu2 %v1135_v7  ;;  %1172 = vmatpush.bf16.msra.mxu3 %v1136_v21  ;;  %v780_v28 = vpop.f32.mrf.mxu0  ;;  %v799_v30 = vpop.f32.mrf.mxu1  ;;  %v719_v7 = vadd.f32 %v708_v13, %v2079_v29 }
 0x1c2   : > { %v691_v62 = vpop.f32.mrf.mxu2 }
 0x1c3   : > { %v1121_v53 = vpop.permute.xlu0 %1120 }
 0x1c5   : > { %v1123_v59 = vpop.permute.xlu1 %1122  ;;  %v710_v4 = vpop.f32.mrf.mxu3 }
 0x1c6   : > { %v1133_v55 = vsel %vm1132_vm12, %v1121_v53, %v1123_v59  ;;  %v1134_v14 = vsel %vm1132_vm12, %v1123_v59, %v1125_v10 }
 0x1c7   : > { %1154 = vmatpush.bf16.msra.mxu2 %v1133_v55  ;;  %1173 = vmatpush.bf16.msra.mxu3 %v1134_v14  ;;  %v782_v33 = vpop.f32.mrf.mxu0  ;;  %v801_v36 = vpop.f32.mrf.mxu1  ;;  %v809_v55 = vadd.f32 %v780_v28, %v718_v9  ;;  %v810_v14 = vadd.f32 %v799_v30, %v719_v7 }
 0x1ca   : > { %1614 = vmatmul.msk.bf16.vlgmr.msra.gmra.mxu2 %vm354_vm8, %v1668_v15  ;;  %1616 = vmatmul.msk.bf16.vlgmr.msra.gmra.mxu3 %vm354_vm8, %v1668_v15  ;;  %v694_v32 = vpop.f32.mrf.mxu2 }
 0x1cb   : > { %1575 = vmatmul.msk.bf16.gmra.mxu0 %vm354_vm8, %v1667_v16  ;;  %1577 = vmatmul.msk.bf16.gmra.mxu1 %vm354_vm8, %v1667_v16  ;;  %v1248_v19 = vpop.permute.xlu0 %1247 }
 0x1cd   : > { %v1250_v52 = vpop.permute.xlu1 %1249  ;;  %v713_v31 = vpop.f32.mrf.mxu3 }
 0x1ce   : > { %v1256_v22 = vsel %vm265_vm4, %v1248_v19, %v1250_v52  ;;  %v1257_v23 = vsel %vm265_vm4, %v1250_v52, %v1252_v18  ;;  %v720_v18 = vadd.f32 %v691_v62, %v2085_v34  ;;  %v721_v19 = vadd.f32 %v710_v4, %v2087_v35 }
 0x1cf   : > { %1274 = vmatpush.bf16.msra.mxu0 %v1256_v22  ;;  %1293 = vmatpush.bf16.msra.mxu1 %v1257_v23  ;;  %v785_v39 = vpop.f32.mrf.mxu0  ;;  %v804_v40 = vpop.f32.mrf.mxu1  ;;  %v722_v35 = vadd.f32 %v694_v32, %v2097_v56  ;;  %v723_v12 = vadd.f32 %v713_v31, %v2099_v0 }
 0x1d1   : > { %v813_v0 = vadd.f32 %v785_v39, %v722_v35  ;;  %v814_v31 = vadd.f32 %v804_v40, %v723_v12 }
 0x1d2   : > { %v2156_v37 = vpop.f32.mrf.mxu2 }
 0x1d3   : > { %v1242_v25 = vpop.permute.xlu0 %1241  ;;  %v724_v9 = vadd.f32 %v2156_v37, %v2110_v45 }
 0x1d5   : > { %v1244_v5 = vpop.permute.xlu1 %1243  ;;  %v2158_v38 = vpop.f32.mrf.mxu3 }
 0x1d6   : > { %v1254_v6 = vsel %vm265_vm4, %v1242_v25, %v1244_v5  ;;  %v1255_v26 = vsel %vm265_vm4, %v1244_v5, %v1246_v58  ;;  %v811_v58 = vadd.f32 %v782_v33, %v720_v18  ;;  %v812_v5 = vadd.f32 %v801_v36, %v721_v19 }
 0x1d7   : > { %1275 = vmatpush.bf16.msra.mxu0 %v1254_v6  ;;  %1294 = vmatpush.bf16.msra.mxu1 %v1255_v26  ;;  %v2160_v43 = vpop.f32.mrf.mxu0  ;;  %v2162_v44 = vpop.f32.mrf.mxu1  ;;  %v725_v7 = vadd.f32 %v2158_v38, %v2112_v11 }
 0x1d9   : > { %v816_v18 = vadd.f32 %v2162_v44, %v725_v7 }
 0x1da   : > { %1615 = vmatmul.msk.bf16.gmra.mxu2 %vm354_vm8, %v1669_v17  ;;  %1617 = vmatmul.msk.bf16.gmra.mxu3 %vm354_vm8, %v1669_v17 }
 0x1db   : > { %1630 = vmatmul.msk.bf16.vlgmr.msra.gmra.mxu0 %vm354_vm8, %v1670_v49  ;;  %1632 = vmatmul.msk.bf16.vlgmr.msra.gmra.mxu1 %vm354_vm8, %v1670_v49  ;;  %v1321_v52 = vpop.permute.xlu0 %1320 }
 0x1eb   : > { %1631 = vmatmul.msk.bf16.gmra.mxu0 %vm354_vm8, %v1671_v50  ;;  %1633 = vmatmul.msk.bf16.gmra.mxu1 %vm354_vm8, %v1671_v50 }
 0x212   : > { %v1326_v36 = vpop.permute.xlu1 %1325 }
 0x22d   : > { %v921_v41 = vpop.f32.mrf.mxu2  ;;  %v940_v42 = vpop.f32.mrf.mxu3 }
 0x22e   : > { %v950_v15 = vadd.f32 %v921_v41, %v809_v55  ;;  %v951_v16 = vadd.f32 %v940_v42, %v810_v14 }
 0x235   : > { %v923_v47 = vpop.f32.mrf.mxu2  ;;  %v942_v48 = vpop.f32.mrf.mxu3 }
 0x236   : > { %v952_v17 = vadd.f32 %v923_v47, %v811_v58  ;;  %v953_v49 = vadd.f32 %v942_v48, %v812_v5 }
 0x238   : > { %v1042_v63 = vpop.f32.mrf.mxu0  ;;  %v1061_v54 = vpop.f32.mrf.mxu1 }
 0x239   : > { %v1071_v20 = vadd.f32 %v1042_v63, %v950_v15  ;;  %v1072_v51 = vadd.f32 %v1061_v54, %v951_v16  ;;  %v1331_v15 = vpop.permute.xlu2 %1330 }
 0x23d   : > { %v926_v1 = vpop.f32.mrf.mxu2  ;;  %v945_v2 = vpop.f32.mrf.mxu3 }
 0x23e   : > { %v954_v63 = vadd.f32 %v926_v1, %v813_v0  ;;  %v955_v54 = vadd.f32 %v945_v2, %v814_v31  ;;  %v815_v2 = vadd.f32 %v2160_v43, %v724_v9 }
 0x240   : > { %v1044_v46 = vpop.f32.mrf.mxu0  ;;  %v1063_v8 = vpop.f32.mrf.mxu1 }
 0x241   : > { %v1073_v13 = vadd.f32 %v1044_v46, %v952_v17  ;;  %v1074_v62 = vadd.f32 %v1063_v8, %v953_v49 }
 0x245   : > { %v2164_v57 = vpop.f32.mrf.mxu2  ;;  %v2166_v60 = vpop.f32.mrf.mxu3 }
 0x246   : > { %v956_v11 = vadd.f32 %v2164_v57, %v815_v2  ;;  %v957_v38 = vadd.f32 %v2166_v60, %v816_v18 }
 0x248   : > { %v1047_v61 = vpop.f32.mrf.mxu0  ;;  %v1066_v3 = vpop.f32.mrf.mxu1 }
 0x24d   : > { %v1156_v21 = vpop.f32.mrf.mxu2  ;;  %v1175_v10 = vpop.f32.mrf.mxu3 }
 0x24e   : > { %v1185_v27 = vadd.f32 %v1156_v21, %v1071_v20  ;;  %v1186_v29 = vadd.f32 %v1175_v10, %v1072_v51  ;;  %v1075_v21 = vadd.f32 %v1047_v61, %v954_v63  ;;  %v1076_v10 = vadd.f32 %v1066_v3, %v955_v54 }
 0x250   : > { %v2170_v53 = vpop.f32.mrf.mxu0  ;;  %v2172_v59 = vpop.f32.mrf.mxu1 }
 0x251   : > { %v1077_v51 = vadd.f32 %v2170_v53, %v956_v11 }
 0x255   : > { %v1158_v22 = vpop.f32.mrf.mxu2  ;;  %v1177_v23 = vpop.f32.mrf.mxu3 }
 0x256   : > { %v1187_v30 = vadd.f32 %v1158_v22, %v1073_v13  ;;  %v1188_v33 = vadd.f32 %v1177_v23, %v1074_v62 }
 0x258   : > { %v1277_v24 = vpop.f32.mrf.mxu0  ;;  %v1296_v25 = vpop.f32.mrf.mxu1 }
 0x259   : > { %v1306_v6 = vadd.f32 %v1277_v24, %v1185_v27  ;;  %v1307_v26 = vadd.f32 %v1296_v25, %v1186_v29  ;;  %v1336_v24 = vpop.permute.xlu1 %1335 }
 0x25b   : > { %v1338_v50 = vadd.f32 %v1321_v52, %v1306_v6  ;;  %v1339_v34 = vadd.f32 %v1321_v52, %v1307_v26  ;;  %v1078_v52 = vadd.f32 %v2172_v59, %v957_v38 }
 0x25d   : > { %v1346_v4 = vmax.f32 %v1338_v50, 0.0  ;;  %v1347_v28 = vmax.f32 %v1339_v34, 0.0  ;;  %v1161_v47 = vpop.f32.mrf.mxu2  ;;  %v1180_v48 = vpop.f32.mrf.mxu3 }
 0x25e   : > { %v1189_v55 = vadd.f32 %v1161_v47, %v1075_v21  ;;  %v1190_v14 = vadd.f32 %v1180_v48, %v1076_v10 }
 0x25f   : > { %1354 = vst [vmem:[%s2183_s24] sm:$0xff] %v1346_v4 }
 0x260   : > { %1355 = vst [vmem:[%s2183_s24 + $0x8] sm:$0xff] %v1347_v28  ;;  %v1279_v56 = vpop.f32.mrf.mxu0  ;;  %v1298_v32 = vpop.f32.mrf.mxu1 }
 0x261   : > { %v1308_v41 = vadd.f32 %v1279_v56, %v1187_v30  ;;  %v1309_v42 = vadd.f32 %v1298_v32, %v1188_v33 }
 0x263   : > { %v1340_v46 = vadd.f32 %v1326_v36, %v1308_v41  ;;  %v1341_v8 = vadd.f32 %v1326_v36, %v1309_v42 }
 0x265   : > { %v1348_v39 = vmax.f32 %v1340_v46, 0.0  ;;  %v1349_v40 = vmax.f32 %v1341_v8, 0.0  ;;  %v1163_v19 = vpop.f32.mrf.mxu2  ;;  %v1182_v20 = vpop.f32.mrf.mxu3 }
 0x266   : > { %v1191_v44 = vadd.f32 %v1163_v19, %v1077_v51  ;;  %v1192_v29 = vadd.f32 %v1182_v20, %v1078_v52 }
 0x267   : > { %1356 = vst [vmem:[%s2183_s24 + $0x10] sm:$0xff] %v1348_v39 }
 0x268   : > { %1357 = vst [vmem:[%s2183_s24 + $0x18] sm:$0xff] %v1349_v40  ;;  %v1282_v16 = vpop.f32.mrf.mxu0  ;;  %v1301_v1 = vpop.f32.mrf.mxu1 }
 0x269   : > { %v1310_v45 = vadd.f32 %v1282_v16, %v1189_v55  ;;  %v1311_v37 = vadd.f32 %v1301_v1, %v1190_v14 }
 0x26b   : > { %v1342_v61 = vadd.f32 %v1331_v15, %v1310_v45  ;;  %v1343_v3 = vadd.f32 %v1331_v15, %v1311_v37 }
 0x26d   : > { %v1350_v43 = vmax.f32 %v1342_v61, 0.0  ;;  %v1351_v27 = vmax.f32 %v1343_v3, 0.0 }
 0x26f   : > { %1358 = vst [vmem:[%s2183_s24 + $0x20] sm:$0xff] %v1350_v43 }
 0x270   : > { %1359 = vst [vmem:[%s2183_s24 + $0x28] sm:$0xff] %v1351_v27  ;;  %v1284_v22 = vpop.f32.mrf.mxu0  ;;  %v1303_v57 = vpop.f32.mrf.mxu1 }
 0x271   : > { %v1312_v23 = vadd.f32 %v1284_v22, %v1191_v44  ;;  %v1313_v60 = vadd.f32 %v1303_v57, %v1192_v29 }
 0x273   : > { %v1344_v25 = vadd.f32 %v1336_v24, %v1312_v23  ;;  %v1345_v58 = vadd.f32 %v1336_v24, %v1313_v60 }
 0x275   : > { %v1352_v5 = vmax.f32 %v1344_v25, 0.0  ;;  %v1353_v6 = vmax.f32 %v1345_v58, 0.0 }
 0x277   : > { %1360 = vst [vmem:[%s2183_s24 + $0x30] sm:$0xff] %v1352_v5 }
 0x278   : > { %1361 = vst [vmem:[%s2183_s24 + $0x38] sm:$0xff] %v1353_v6 }
 0x279 PF: > { %s13_s12 = sadd.s32 1, %s1733_s12  }
 0x27a   : > { %p10_p4 = scmp.ge.s32.totalorder %s13_s12, 4  }
 0x27c   :  { %12 = sbr.rel (!%p10_p4) target bundleno = 1 (0x1), region = 70 }

</bundles_post_ra>
